<compile_context>
chip_gen: v7x
topology: tpu7x:2x2x1
jax: 0.10.0
libtpu: 0.0.40
codegen_flags: <defaults>
</compile_context>

<pallas_src>
import jax
import jax.numpy as jnp
from jax.experimental import pallas as pl
from jax.experimental.pallas import tpu as pltpu

VOCAB = 10     # nn.Embedding(10, 32)
EMBED = 32
HIDDEN = 64    # self.hidden_dim = 64, RNN input_size = 64 (= 2 * EMBED)
NCLASS = 10    # nn.Linear(64, 10)


def rnn_kernel(x_ref, h0_ref, wih0_ref, whh0_ref, wcat_ref, bias_ref,
               wd_ref, bd_ref, logits_ref, hout_ref):
    """Whole problem resident in VMEM.

    x_ref      : (S*B, 64)        time-major input rows (row t*B+b = x[t, b])
    h0_ref     : (L, B, 64)       initial hidden state
    wih0_ref   : (64, 64)         layer-0 input->hidden weights, (in, out)
    whh0_ref   : (64, 64)         layer-0 hidden->hidden weights, (in, out)
    wcat_ref   : (max(L-1,1), 128, 64)  layers l>=1: [w_ih[l]; w_hh[l]] stacked
    bias_ref   : (L, 1, 64)       b_ih + b_hh (pre-summed)
    wd_ref     : (64, 10)         dense weight, (in, out)
    bd_ref     : (1, 10)
    logits_ref : (S*B, 10)        output logits (time-major rows)
    hout_ref   : (L, B, 64)       final hidden state
    """
    L, B, H = h0_ref.shape
    S = x_ref.shape[0] // B

    # ---- Hoisted, non-recurrent work: single large MXU ops --------------
    # Layer-0 input projection for every timestep at once, bias folded in.
    pre0 = (jnp.dot(x_ref[...], wih0_ref[...],
                    preferred_element_type=jnp.float32)
            + bias_ref[0])                                     # (S*B, 64)

    whh0 = whh0_ref[...]                                       # (64, 64)
    wcats = [wcat_ref[l - 1] for l in range(1, L)]             # (128, 64) each
    # Hoist loop-invariant bias broadcasts (JAX does not CSE broadcast_in_dim
    # inside the loop body).
    biases = [jnp.broadcast_to(bias_ref[l], (B, H)) for l in range(1, L)]

    # ---- Serial recurrence, fully unrolled (S, L are trace-time consts) -
    h = [h0_ref[l] for l in range(L)]                          # (B, 64) each
    tops = []
    for t in range(S):
        # Layer 0: only the recurrent matmul remains on the critical path.
        h[0] = jnp.tanh(pre0[t * B:(t + 1) * B, :]
                        + jnp.dot(h[0], whh0,
                                  preferred_element_type=jnp.float32))
        inp = h[0]
        # Layers > 0: one fused (B,128)@(128,64) matmul per layer per step.
        for l in range(1, L):
            cat = jnp.concatenate([inp, h[l]], axis=-1)        # (B, 128)
            h[l] = jnp.tanh(jnp.dot(cat, wcats[l - 1],
                                    preferred_element_type=jnp.float32)
                            + biases[l - 1])
            inp = h[l]
        tops.append(inp)

    # ---- Final dense: ONE matmul + ONE (lane-wise contiguous) store -----
    hseq = jnp.concatenate(tops, axis=0)                       # (S*B, 64)
    logits_ref[...] = (jnp.dot(hseq, wd_ref[...],
                               preferred_element_type=jnp.float32)
                       + bd_ref[...]).astype(logits_ref.dtype)

    for l in range(L):
        hout_ref[l] = h[l]


def make_params(n_layer, key):
    """Deterministic synthetic parameters (shapes match the PyTorch module)."""
    ks = jax.random.split(key, 8)
    scale = 1.0 / jnp.sqrt(jnp.float32(HIDDEN))
    u = lambda k, shape: jax.random.uniform(k, shape, jnp.float32, -scale, scale)
    return dict(
        embedding=jax.random.normal(ks[0], (VOCAB, EMBED), jnp.float32) * 0.1,
        # PyTorch stores (hidden, in); we store pre-transposed (in, hidden).
        w_ih=u(ks[1], (n_layer, HIDDEN, HIDDEN)),
        w_hh=u(ks[2], (n_layer, HIDDEN, HIDDEN)),
        b_ih=u(ks[3], (n_layer, 1, HIDDEN)),
        b_hh=u(ks[4], (n_layer, 1, HIDDEN)),
        w_dense=u(ks[5], (HIDDEN, NCLASS)),
        b_dense=u(ks[6], (1, NCLASS)),
    )


def rnn_forward_pallas(num1, num2, h0, params):
    """Equivalent of myAdvPTRNNModel.rnn_forward (type='rnn')."""
    B, S = num1.shape
    L = h0.shape[0]

    # XLA glue: embedding lookup, concat, time-major layout, row-flatten.
    emb = params["embedding"]
    x = jnp.concatenate([jnp.take(emb, num1, axis=0),
                         jnp.take(emb, num2, axis=0)], axis=2)   # (B, S, 64)
    x = jnp.transpose(x, (1, 0, 2)).reshape(S * B, 2 * EMBED)    # (S*B, 64)

    # Pre-fold loop-invariant parameter algebra (done once, outside kernel).
    bias = params["b_ih"] + params["b_hh"]                       # (L, 1, 64)
    wih0 = params["w_ih"][0]                                     # (64, 64)
    whh0 = params["w_hh"][0]                                     # (64, 64)
    if L > 1:
        # [w_ih[l]; w_hh[l]] stacked along the input axis -> K = 128.
        wcat = jnp.concatenate([params["w_ih"][1:], params["w_hh"][1:]],
                               axis=1)                           # (L-1,128,64)
    else:
        wcat = jnp.zeros((1, 2 * HIDDEN, HIDDEN), jnp.float32)   # unused dummy

    vmem = pl.BlockSpec(memory_space=pltpu.MemorySpace.VMEM)
    logits2d, h_out = pl.pallas_call(
        rnn_kernel,
        out_shape=(jax.ShapeDtypeStruct((S * B, NCLASS), jnp.float32),
                   jax.ShapeDtypeStruct((L, B, HIDDEN), jnp.float32)),
        in_specs=[vmem] * 8,
        out_specs=(vmem, vmem),
    )(x, h0, wih0, whh0, wcat, bias, params["w_dense"], params["b_dense"])

    logits = jnp.transpose(logits2d.reshape(S, B, NCLASS), (1, 0, 2))  # (B,S,10)
    return logits, h_out


def rnn_forward_ref(num1, num2, h0, params):
    """Pure-JAX reference mirroring torch semantics, for verification."""
    emb = params["embedding"]
    x = jnp.concatenate([jnp.take(emb, num1, axis=0),
                         jnp.take(emb, num2, axis=0)], axis=2)   # (B, S, 64)
    x = jnp.transpose(x, (1, 0, 2))                              # (S, B, 64)
    S = x.shape[0]
    L = h0.shape[0]
    h = [h0[l] for l in range(L)]
    outs = []
    for t in range(S):
        inp = x[t]
        for l in range(L):
            h[l] = jnp.tanh(inp @ params["w_ih"][l] + params["b_ih"][l]
                            + h[l] @ params["w_hh"][l] + params["b_hh"][l])
            inp = h[l]
        outs.append(inp @ params["w_dense"] + params["b_dense"])
    logits = jnp.transpose(jnp.stack(outs, axis=0), (1, 0, 2))
    return logits, jnp.stack(h, axis=0)


if __name__ == "__main__":
    B, S, L = 2, 8, 2                                            # batch, seq, n_layer
    key = jax.random.PRNGKey(0)
    k_par, k_n1, k_n2 = jax.random.split(key, 3)

    params = make_params(L, k_par)
    num1 = jax.random.randint(k_n1, (B, S), 0, VOCAB, dtype=jnp.int32)
    num2 = jax.random.randint(k_n2, (B, S), 0, VOCAB, dtype=jnp.int32)
    h0 = jnp.zeros((L, B, HIDDEN), jnp.float32)                  # init_hidden()

    logits, h_out = rnn_forward_pallas(num1, num2, h0, params)
    jax.block_until_ready((logits, h_out))

    logits_ref, h_ref = rnn_forward_ref(num1, num2, h0, params)
    assert logits.shape == (B, S, NCLASS)
    assert h_out.shape == (L, B, HIDDEN)
    assert jnp.allclose(logits, logits_ref, atol=1e-5, rtol=1e-5)
    assert jnp.allclose(h_out, h_ref, atol=1e-5, rtol=1e-5)
    print("KERNEL_OK")
</pallas_src>

<mosaic_0001>
module attributes {stable_mosaic.version = 11 : i64} {
  func.func @rnn_kernel(%arg0: memref<16x64xf32, #tpu.memory_space<vmem>>, %arg1: memref<2x2x64xf32, #tpu.memory_space<vmem>>, %arg2: memref<64x64xf32, #tpu.memory_space<vmem>>, %arg3: memref<64x64xf32, #tpu.memory_space<vmem>>, %arg4: memref<1x128x64xf32, #tpu.memory_space<vmem>>, %arg5: memref<2x1x64xf32, #tpu.memory_space<vmem>>, %arg6: memref<64x10xf32, #tpu.memory_space<vmem>>, %arg7: memref<1x10xf32, #tpu.memory_space<vmem>>, %arg8: memref<16x10xf32, #tpu.memory_space<vmem>>, %arg9: memref<2x2x64xf32, #tpu.memory_space<vmem>>) attributes {dimension_semantics = [], scalar_prefetch = 0 : i64, scratch_operands = 0 : i64, tpu.core_type = #tpu.core_type<tc>} {
    %c0 = arith.constant 0 : index
    %c0_0 = arith.constant 0 : index
    %0 = vector.load %arg0[%c0, %c0_0] : memref<16x64xf32, #tpu.memory_space<vmem>>, vector<16x64xf32>
    %c0_1 = arith.constant 0 : index
    %c0_2 = arith.constant 0 : index
    %1 = vector.load %arg2[%c0_1, %c0_2] : memref<64x64xf32, #tpu.memory_space<vmem>>, vector<64x64xf32>
    %cst = arith.constant dense<0.000000e+00> : vector<16x64xf32>
    %2 = tpu.matmul %0, %1, %cst {dimension_numbers = #tpu.dot_dimension_numbers<[1], [0], [0], [1], [0, 0, 1, 1], [], []>} : vector<16x64xf32>, vector<64x64xf32>, vector<16x64xf32> -> vector<16x64xf32>
    %c0_3 = arith.constant 0 : index
    %c0_4 = arith.constant 0 : index
    %c0_5 = arith.constant 0 : index
    %3 = vector.load %arg5[%c0_3, %c0_4, %c0_5] : memref<2x1x64xf32, #tpu.memory_space<vmem>>, vector<1x1x64xf32>
    %4 = vector.shape_cast %3 : vector<1x1x64xf32> to vector<1x64xf32>
    %5 = vector.broadcast %4 : vector<1x64xf32> to vector<16x64xf32>
    %6 = arith.addf %2, %5 : vector<16x64xf32>
    %c0_6 = arith.constant 0 : index
    %c0_7 = arith.constant 0 : index
    %7 = vector.load %arg3[%c0_6, %c0_7] : memref<64x64xf32, #tpu.memory_space<vmem>>, vector<64x64xf32>
    %c0_8 = arith.constant 0 : index
    %c0_9 = arith.constant 0 : index
    %c0_10 = arith.constant 0 : index
    %8 = vector.load %arg4[%c0_8, %c0_9, %c0_10] : memref<1x128x64xf32, #tpu.memory_space<vmem>>, vector<1x128x64xf32>
    %9 = vector.shape_cast %8 : vector<1x128x64xf32> to vector<128x64xf32>
    %c1 = arith.constant 1 : index
    %c0_11 = arith.constant 0 : index
    %c0_12 = arith.constant 0 : index
    %10 = vector.load %arg5[%c1, %c0_11, %c0_12] : memref<2x1x64xf32, #tpu.memory_space<vmem>>, vector<1x1x64xf32>
    %11 = vector.shape_cast %10 : vector<1x1x64xf32> to vector<1x64xf32>
    %12 = vector.shape_cast %11 : vector<1x64xf32> to vector<1x64xf32>
    %13 = vector.broadcast %12 : vector<1x64xf32> to vector<2x64xf32>
    %c0_13 = arith.constant 0 : index
    %c0_14 = arith.constant 0 : index
    %c0_15 = arith.constant 0 : index
    %14 = vector.load %arg1[%c0_13, %c0_14, %c0_15] : memref<2x2x64xf32, #tpu.memory_space<vmem>>, vector<1x2x64xf32>
    %15 = vector.shape_cast %14 : vector<1x2x64xf32> to vector<2x64xf32>
    %c1_16 = arith.constant 1 : index
    %c0_17 = arith.constant 0 : index
    %c0_18 = arith.constant 0 : index
    %16 = vector.load %arg1[%c1_16, %c0_17, %c0_18] : memref<2x2x64xf32, #tpu.memory_space<vmem>>, vector<1x2x64xf32>
    %17 = vector.shape_cast %16 : vector<1x2x64xf32> to vector<2x64xf32>
    %18 = vector.extract_strided_slice %6 {offsets = [0, 0], sizes = [2, 64], strides = [1, 1]} : vector<16x64xf32> to vector<2x64xf32>
    %cst_19 = arith.constant dense<0.000000e+00> : vector<2x64xf32>
    %19 = tpu.matmul %15, %7, %cst_19 {dimension_numbers = #tpu.dot_dimension_numbers<[1], [0], [0], [1], [0, 0, 1, 1], [], []>} : vector<2x64xf32>, vector<64x64xf32>, vector<2x64xf32> -> vector<2x64xf32>
    %20 = arith.addf %18, %19 : vector<2x64xf32>
    %21 = math.tanh %20 : vector<2x64xf32>
    %22 = tpu.concatenate %21, %17 in 1 : vector<2x64xf32>, vector<2x64xf32> -> vector<2x128xf32>
    %cst_20 = arith.constant dense<0.000000e+00> : vector<2x64xf32>
    %23 = tpu.matmul %22, %9, %cst_20 {dimension_numbers = #tpu.dot_dimension_numbers<[1], [0], [0], [1], [0, 0, 1, 1], [], []>} : vector<2x128xf32>, vector<128x64xf32>, vector<2x64xf32> -> vector<2x64xf32>
    %24 = arith.addf %23, %13 : vector<2x64xf32>
    %25 = math.tanh %24 : vector<2x64xf32>
    %26 = vector.extract_strided_slice %6 {offsets = [2, 0], sizes = [2, 64], strides = [1, 1]} : vector<16x64xf32> to vector<2x64xf32>
    %cst_21 = arith.constant dense<0.000000e+00> : vector<2x64xf32>
    %27 = tpu.matmul %21, %7, %cst_21 {dimension_numbers = #tpu.dot_dimension_numbers<[1], [0], [0], [1], [0, 0, 1, 1], [], []>} : vector<2x64xf32>, vector<64x64xf32>, vector<2x64xf32> -> vector<2x64xf32>
    %28 = arith.addf %26, %27 : vector<2x64xf32>
    %29 = math.tanh %28 : vector<2x64xf32>
    %30 = tpu.concatenate %29, %25 in 1 : vector<2x64xf32>, vector<2x64xf32> -> vector<2x128xf32>
    %cst_22 = arith.constant dense<0.000000e+00> : vector<2x64xf32>
    %31 = tpu.matmul %30, %9, %cst_22 {dimension_numbers = #tpu.dot_dimension_numbers<[1], [0], [0], [1], [0, 0, 1, 1], [], []>} : vector<2x128xf32>, vector<128x64xf32>, vector<2x64xf32> -> vector<2x64xf32>
    %32 = arith.addf %31, %13 : vector<2x64xf32>
    %33 = math.tanh %32 : vector<2x64xf32>
    %34 = vector.extract_strided_slice %6 {offsets = [4, 0], sizes = [2, 64], strides = [1, 1]} : vector<16x64xf32> to vector<2x64xf32>
    %cst_23 = arith.constant dense<0.000000e+00> : vector<2x64xf32>
    %35 = tpu.matmul %29, %7, %cst_23 {dimension_numbers = #tpu.dot_dimension_numbers<[1], [0], [0], [1], [0, 0, 1, 1], [], []>} : vector<2x64xf32>, vector<64x64xf32>, vector<2x64xf32> -> vector<2x64xf32>
    %36 = arith.addf %34, %35 : vector<2x64xf32>
    %37 = math.tanh %36 : vector<2x64xf32>
    %38 = tpu.concatenate %37, %33 in 1 : vector<2x64xf32>, vector<2x64xf32> -> vector<2x128xf32>
    %cst_24 = arith.constant dense<0.000000e+00> : vector<2x64xf32>
    %39 = tpu.matmul %38, %9, %cst_24 {dimension_numbers = #tpu.dot_dimension_numbers<[1], [0], [0], [1], [0, 0, 1, 1], [], []>} : vector<2x128xf32>, vector<128x64xf32>, vector<2x64xf32> -> vector<2x64xf32>
    %40 = arith.addf %39, %13 : vector<2x64xf32>
    %41 = math.tanh %40 : vector<2x64xf32>
    %42 = vector.extract_strided_slice %6 {offsets = [6, 0], sizes = [2, 64], strides = [1, 1]} : vector<16x64xf32> to vector<2x64xf32>
    %cst_25 = arith.constant dense<0.000000e+00> : vector<2x64xf32>
    %43 = tpu.matmul %37, %7, %cst_25 {dimension_numbers = #tpu.dot_dimension_numbers<[1], [0], [0], [1], [0, 0, 1, 1], [], []>} : vector<2x64xf32>, vector<64x64xf32>, vector<2x64xf32> -> vector<2x64xf32>
    %44 = arith.addf %42, %43 : vector<2x64xf32>
    %45 = math.tanh %44 : vector<2x64xf32>
    %46 = tpu.concatenate %45, %41 in 1 : vector<2x64xf32>, vector<2x64xf32> -> vector<2x128xf32>
    %cst_26 = arith.constant dense<0.000000e+00> : vector<2x64xf32>
    %47 = tpu.matmul %46, %9, %cst_26 {dimension_numbers = #tpu.dot_dimension_numbers<[1], [0], [0], [1], [0, 0, 1, 1], [], []>} : vector<2x128xf32>, vector<128x64xf32>, vector<2x64xf32> -> vector<2x64xf32>
    %48 = arith.addf %47, %13 : vector<2x64xf32>
    %49 = math.tanh %48 : vector<2x64xf32>
    %50 = vector.extract_strided_slice %6 {offsets = [8, 0], sizes = [2, 64], strides = [1, 1]} : vector<16x64xf32> to vector<2x64xf32>
    %cst_27 = arith.constant dense<0.000000e+00> : vector<2x64xf32>
    %51 = tpu.matmul %45, %7, %cst_27 {dimension_numbers = #tpu.dot_dimension_numbers<[1], [0], [0], [1], [0, 0, 1, 1], [], []>} : vector<2x64xf32>, vector<64x64xf32>, vector<2x64xf32> -> vector<2x64xf32>
    %52 = arith.addf %50, %51 : vector<2x64xf32>
    %53 = math.tanh %52 : vector<2x64xf32>
    %54 = tpu.concatenate %53, %49 in 1 : vector<2x64xf32>, vector<2x64xf32> -> vector<2x128xf32>
    %cst_28 = arith.constant dense<0.000000e+00> : vector<2x64xf32>
    %55 = tpu.matmul %54, %9, %cst_28 {dimension_numbers = #tpu.dot_dimension_numbers<[1], [0], [0], [1], [0, 0, 1, 1], [], []>} : vector<2x128xf32>, vector<128x64xf32>, vector<2x64xf32> -> vector<2x64xf32>
    %56 = arith.addf %55, %13 : vector<2x64xf32>
    %57 = math.tanh %56 : vector<2x64xf32>
    %58 = vector.extract_strided_slice %6 {offsets = [10, 0], sizes = [2, 64], strides = [1, 1]} : vector<16x64xf32> to vector<2x64xf32>
    %cst_29 = arith.constant dense<0.000000e+00> : vector<2x64xf32>
    %59 = tpu.matmul %53, %7, %cst_29 {dimension_numbers = #tpu.dot_dimension_numbers<[1], [0], [0], [1], [0, 0, 1, 1], [], []>} : vector<2x64xf32>, vector<64x64xf32>, vector<2x64xf32> -> vector<2x64xf32>
    %60 = arith.addf %58, %59 : vector<2x64xf32>
    %61 = math.tanh %60 : vector<2x64xf32>
    %62 = tpu.concatenate %61, %57 in 1 : vector<2x64xf32>, vector<2x64xf32> -> vector<2x128xf32>
    %cst_30 = arith.constant dense<0.000000e+00> : vector<2x64xf32>
    %63 = tpu.matmul %62, %9, %cst_30 {dimension_numbers = #tpu.dot_dimension_numbers<[1], [0], [0], [1], [0, 0, 1, 1], [], []>} : vector<2x128xf32>, vector<128x64xf32>, vector<2x64xf32> -> vector<2x64xf32>
    %64 = arith.addf %63, %13 : vector<2x64xf32>
    %65 = math.tanh %64 : vector<2x64xf32>
    %66 = vector.extract_strided_slice %6 {offsets = [12, 0], sizes = [2, 64], strides = [1, 1]} : vector<16x64xf32> to vector<2x64xf32>
    %cst_31 = arith.constant dense<0.000000e+00> : vector<2x64xf32>
    %67 = tpu.matmul %61, %7, %cst_31 {dimension_numbers = #tpu.dot_dimension_numbers<[1], [0], [0], [1], [0, 0, 1, 1], [], []>} : vector<2x64xf32>, vector<64x64xf32>, vector<2x64xf32> -> vector<2x64xf32>
    %68 = arith.addf %66, %67 : vector<2x64xf32>
    %69 = math.tanh %68 : vector<2x64xf32>
    %70 = tpu.concatenate %69, %65 in 1 : vector<2x64xf32>, vector<2x64xf32> -> vector<2x128xf32>
    %cst_32 = arith.constant dense<0.000000e+00> : vector<2x64xf32>
    %71 = tpu.matmul %70, %9, %cst_32 {dimension_numbers = #tpu.dot_dimension_numbers<[1], [0], [0], [1], [0, 0, 1, 1], [], []>} : vector<2x128xf32>, vector<128x64xf32>, vector<2x64xf32> -> vector<2x64xf32>
    %72 = arith.addf %71, %13 : vector<2x64xf32>
    %73 = math.tanh %72 : vector<2x64xf32>
    %74 = vector.extract_strided_slice %6 {offsets = [14, 0], sizes = [2, 64], strides = [1, 1]} : vector<16x64xf32> to vector<2x64xf32>
    %cst_33 = arith.constant dense<0.000000e+00> : vector<2x64xf32>
    %75 = tpu.matmul %69, %7, %cst_33 {dimension_numbers = #tpu.dot_dimension_numbers<[1], [0], [0], [1], [0, 0, 1, 1], [], []>} : vector<2x64xf32>, vector<64x64xf32>, vector<2x64xf32> -> vector<2x64xf32>
    %76 = arith.addf %74, %75 : vector<2x64xf32>
    %77 = math.tanh %76 : vector<2x64xf32>
    %78 = tpu.concatenate %77, %73 in 1 : vector<2x64xf32>, vector<2x64xf32> -> vector<2x128xf32>
    %cst_34 = arith.constant dense<0.000000e+00> : vector<2x64xf32>
    %79 = tpu.matmul %78, %9, %cst_34 {dimension_numbers = #tpu.dot_dimension_numbers<[1], [0], [0], [1], [0, 0, 1, 1], [], []>} : vector<2x128xf32>, vector<128x64xf32>, vector<2x64xf32> -> vector<2x64xf32>
    %80 = arith.addf %79, %13 : vector<2x64xf32>
    %81 = math.tanh %80 : vector<2x64xf32>
    %82 = tpu.concatenate %25, %33, %41, %49, %57, %65, %73, %81 in 0 : vector<2x64xf32>, vector<2x64xf32>, vector<2x64xf32>, vector<2x64xf32>, vector<2x64xf32>, vector<2x64xf32>, vector<2x64xf32>, vector<2x64xf32> -> vector<16x64xf32>
    %c0_35 = arith.constant 0 : index
    %c0_36 = arith.constant 0 : index
    %83 = vector.load %arg6[%c0_35, %c0_36] : memref<64x10xf32, #tpu.memory_space<vmem>>, vector<64x10xf32>
    %cst_37 = arith.constant dense<0.000000e+00> : vector<16x10xf32>
    %84 = tpu.matmul %82, %83, %cst_37 {dimension_numbers = #tpu.dot_dimension_numbers<[1], [0], [0], [1], [0, 0, 1, 1], [], []>} : vector<16x64xf32>, vector<64x10xf32>, vector<16x10xf32> -> vector<16x10xf32>
    %c0_38 = arith.constant 0 : index
    %c0_39 = arith.constant 0 : index
    %85 = vector.load %arg7[%c0_38, %c0_39] : memref<1x10xf32, #tpu.memory_space<vmem>>, vector<1x10xf32>
    %86 = vector.broadcast %85 : vector<1x10xf32> to vector<16x10xf32>
    %87 = arith.addf %84, %86 : vector<16x10xf32>
    %c0_40 = arith.constant 0 : index
    %c0_41 = arith.constant 0 : index
    %88 = vector.load %arg8[%c0_40, %c0_41] : memref<16x10xf32, #tpu.memory_space<vmem>>, vector<16x10xf32>
    tpu.vector_store %arg8[%c0_40, %c0_41], %87 {strides = array<i32>} : memref<16x10xf32, #tpu.memory_space<vmem>>, vector<16x10xf32>,
    %c0_42 = arith.constant 0 : index
    %c0_43 = arith.constant 0 : index
    %c0_44 = arith.constant 0 : index
    %89 = vector.load %arg9[%c0_42, %c0_43, %c0_44] : memref<2x2x64xf32, #tpu.memory_space<vmem>>, vector<1x2x64xf32>
    %90 = vector.shape_cast %89 : vector<1x2x64xf32> to vector<2x64xf32>
    %91 = vector.shape_cast %77 : vector<2x64xf32> to vector<1x2x64xf32>
    tpu.vector_store %arg9[%c0_42, %c0_43, %c0_44], %91 {strides = array<i32>} : memref<2x2x64xf32, #tpu.memory_space<vmem>>, vector<1x2x64xf32>,
    %c1_45 = arith.constant 1 : index
    %c0_46 = arith.constant 0 : index
    %c0_47 = arith.constant 0 : index
    %92 = vector.load %arg9[%c1_45, %c0_46, %c0_47] : memref<2x2x64xf32, #tpu.memory_space<vmem>>, vector<1x2x64xf32>
    %93 = vector.shape_cast %92 : vector<1x2x64xf32> to vector<2x64xf32>
    %94 = vector.shape_cast %81 : vector<2x64xf32> to vector<1x2x64xf32>
    tpu.vector_store %arg9[%c1_45, %c0_46, %c0_47], %94 {strides = array<i32>} : memref<2x2x64xf32, #tpu.memory_space<vmem>>, vector<1x2x64xf32>,
    return
  }
}

</mosaic_0001>

<bundles_post_ra>
// kernel: tpu_custom_call.1
= control target key start
LH: loop header
LB: loop body
LE: loop exit
PB: predicated region body
PF: predicated region fallthrough
CT: control target
= control target key end

     0   :  { %15 = vsyncpa [#allocation3], 0  ;;  %v2705_v4 = vmov 0.0|0.0   ;;  %vm2706_vm0 = vmmov 0   ;;  %v2707_v13 = vmov 0.0   ;;  %vm50_vm1 = vcmask 523264   ;;  %s3245_s0 = inlined_call_operand.vmem [shape: f32[16,64], index: 0, kind: input, shape index: {}]   ;;  %s3246_s1 = inlined_call_operand.vmem [shape: f32[2,2,64], index: 1, kind: input, shape index: {}]   ;;  %s3247_s2 = inlined_call_operand.vmem [shape: f32[64,64], index: 2, kind: input, shape index: {}]   ;;  %s3248_s3 = inlined_call_operand.vmem [shape: f32[64,64], index: 3, kind: input, shape index: {}]   ;;  %s3249_s4 = inlined_call_operand.vmem [shape: f32[1,128,64], index: 4, kind: input, shape index: {}]   ;;  %s3250_s5 = inlined_call_operand.vmem [shape: f32[2,1,64], index: 5, kind: input, shape index: {}]   ;;  %s3251_s6 = inlined_call_operand.vmem [shape: f32[64,10], index: 6, kind: input, shape index: {}]   ;;  %s3252_s7 = inlined_call_operand.vmem [shape: f32[1,10], index: 7, kind: input, shape index: {}]   ;;  %s3253_s8 = inlined_call_operand.hbm [shape: f32[16,10], index: 8, kind: output, shape index: {0}]   ;;  %s3254_s9 = inlined_call_operand.hbm [shape: f32[2,2,64], index: 9, kind: output, shape index: {1}]  }
   0x1   :  { %v35_v0 = vld [vmem:[%s3247_s2] sm:$0xff]  ;;  %v36_v1 = vld [vmem:[%s3247_s2 + $0x8] sm:$0xff]  ;;  %2311 = vmatprep.subr.bf16.mxu1 %v2705_v4  ;;  %v37_v6 = vld [vmem:[%s3247_s2 + $0x10] sm:$0xff]  ;;  %1860 = vmatprep.mubr.msk.f32.mxu1 %vm2706_vm0, %v2707_v13  ;;  %s2708_s20 = smov 64  }
   0x2   :  { %v132_v2 = vld [vmem:[%s3248_s3] sm:$0xff]  ;;  %v2295_v3 = vpack.c.bf16 %v36_v1, %v35_v0  ;;  %v133_v5 = vld [vmem:[%s3248_s3 + $0x8] sm:$0xff]  ;;  %v38_v7 = vld [vmem:[%s3247_s2 + $0x18] sm:$0xff] }
   0x3   :  { %v2784_v8 = vpack.c.bf16 %v133_v5, %v132_v2  ;;  %v2299_v9 = vpack.c.bf16 %v38_v7, %v37_v6  ;;  %v134_v10 = vld [vmem:[%s3248_s3 + $0x10] sm:$0xff]  ;;  %v135_v11 = vld [vmem:[%s3248_s3 + $0x18] sm:$0xff]  ;;  %v39_v12 = vld [vmem:[%s3247_s2 + $0x20] sm:$0xff] }
   0x4   :  { %2296 = vmatprep.subr.bf16.mxu0 %v2295_v3  ;;  %v40_v14 = vld [vmem:[%s3247_s2 + $0x28] sm:$0xff]  ;;  %v2801_v15 = vpack.c.bf16 %v135_v11, %v134_v10  ;;  %v33_v16 = vld [vmem:[%s3245_s0] sm:$0xff]  ;;  %v41_v20 = vld [vmem:[%s3247_s2 + $0x30] sm:$0xff] }
   0x5   :  { %2298 = vmatpush3.bf16.msra.mxu0 %v2295_v3  ;;  %2313 = vmatpush3.bf16.msra.mxu1 %v2784_v8  ;;  %v2303_v17 = vpack.c.bf16 %v40_v14, %v39_v12  ;;  %v136_v18 = vld [vmem:[%s3248_s3 + $0x20] sm:$0xff]  ;;  %v137_v19 = vld [vmem:[%s3248_s3 + $0x28] sm:$0xff]  ;;  %v42_v21 = vld [vmem:[%s3247_s2 + $0x38] sm:$0xff] }
   0x6   :  { %2300 = vmatprep.subr.bf16.mxu0 %v2299_v9  ;;  %2314 = vmatprep.subr.bf16.mxu1 %v2705_v4  ;;  %v1585_v22 = vld [vmem:[%s3246_s1 + $0x2] sm:$0x3]  ;;  %v2825_v23 = vpack.c.bf16 %v137_v19, %v136_v18  ;;  %v2307_v24 = vpack.c.bf16 %v42_v21, %v41_v20  ;;  %v138_v25 = vld [vmem:[%s3248_s3 + $0x30] sm:$0xff]  ;;  %v139_v26 = vld [vmem:[%s3248_s3 + $0x38] sm:$0xff] }
   0x7   :  { %1841 = vmatprep.mubr.msk.f32.mxu0 %vm50_vm1, %v33_v16  ;;  %243 = vrot.lane.b32.xlu0 %v1585_v22, %s2708_s20 }
   0x9   :  { %2302 = vmatpush3.bf16.msra.mxu0 %v2299_v9  ;;  %2316 = vmatpush3.bf16.msra.mxu1 %v2801_v15 }
   0xa   :  { %2304 = vmatprep.subr.bf16.mxu0 %v2303_v17  ;;  %2317 = vmatprep.subr.bf16.mxu1 %v2705_v4 }
   0xb   :  { %16 = vsyncpa [#allocation5], 0  ;;  %v2835_v27 = vpack.c.bf16 %v139_v26, %v138_v25  ;;  %v140_v28 = vld [vmem:[%s3249_s4] sm:$0xff]  ;;  %v141_v29 = vld [vmem:[%s3249_s4 + $0x8] sm:$0xff]  ;;  %vm1435_vm2 = vcmask 1041408   ;;  %vm1437_vm3 = vcmask 1043456  }
   0xc   :  { %v34_v30 = vld [vmem:[%s3245_s0 + $0x8] sm:$0xff]  ;;  %v164_v31 = vld [vmem:[%s3246_s1] sm:$0x3]  ;;  %v2851_v32 = vpack.c.bf16 %v141_v29, %v140_v28  ;;  %v142_v33 = vld [vmem:[%s3249_s4 + $0x10] sm:$0xff]  ;;  %vm1439_vm4 = vcmask 1045504   ;;  %vm1543_vm5 = vcmask 523270  }
   0xd   :  { %2306 = vmatpush3.bf16.msra.mxu0 %v2303_v17  ;;  %2319 = vmatpush3.bf16.msra.mxu1 %v2825_v23  ;;  %v143_v34 = vld [vmem:[%s3249_s4 + $0x18] sm:$0xff]  ;;  %v144_v36 = vld [vmem:[%s3249_s4 + $0x20] sm:$0xff]  ;;  %v145_v37 = vld [vmem:[%s3249_s4 + $0x28] sm:$0xff]  ;;  %vm1546_vm6 = vcmask 517120  }
   0xe   :  { %2308 = vmatprep.subr.bf16.mxu0 %v2307_v24  ;;  %2320 = vmatprep.subr.bf16.mxu1 %v2705_v4  ;;  %v2864_v35 = vpack.c.bf16 %v143_v34, %v142_v33  ;;  %v2880_v38 = vpack.c.bf16 %v145_v37, %v144_v36  ;;  %v146_v39 = vld [vmem:[%s3249_s4 + $0x30] sm:$0xff]  ;;  %v147_v40 = vld [vmem:[%s3249_s4 + $0x38] sm:$0xff]  ;;  %v148_v42 = vld [vmem:[%s3249_s4 + $0x40] sm:$0xff] }
   0xf   :  { %v2892_v41 = vpack.c.bf16 %v147_v40, %v146_v39  ;;  %v149_v43 = vld [vmem:[%s3249_s4 + $0x48] sm:$0xff]  ;;  %v150_v45 = vld [vmem:[%s3249_s4 + $0x50] sm:$0xff]  ;;  %v151_v46 = vld [vmem:[%s3249_s4 + $0x58] sm:$0xff] }
  0x10   :  { %v2907_v44 = vpack.c.bf16 %v149_v43, %v148_v42  ;;  %v2917_v47 = vpack.c.bf16 %v151_v46, %v150_v45  ;;  %v152_v48 = vld [vmem:[%s3249_s4 + $0x60] sm:$0xff]  ;;  %v153_v49 = vld [vmem:[%s3249_s4 + $0x68] sm:$0xff]  ;;  %v154_v51 = vld [vmem:[%s3249_s4 + $0x70] sm:$0xff] }
  0x11   :  { %2310 = vmatpush3.bf16.msra.mxu0 %v2307_v24  ;;  %2322 = vmatpush3.bf16.msra.mxu1 %v2835_v27  ;;  %v2926_v50 = vpack.c.bf16 %v153_v49, %v152_v48  ;;  %v155_v52 = vld [vmem:[%s3249_s4 + $0x78] sm:$0xff]  ;;  %v1580_v54 = vld [vmem:[%s3250_s5] ss:$0 sm:$0xff]  ;;  %v2982_v1 = vld [vmem:[%s3250_s5 + $0x1] ss:$0 sm:$0xff] }
  0x12   :  { %2323 = vmatprep.subr.bf16.mxu0 %v2705_v4  ;;  %2347 = vmatprep.subr.bf16.mxu1 %v2705_v4  ;;  %v2936_v53 = vpack.c.bf16 %v155_v52, %v154_v51 }
  0x14   :  { %1842 = vmatmul.mubr.msk.f32.vlgmr.msra.gmra.mrb[0].mxu0 %vm50_vm1, %v34_v30  ;;  %1861 = vmatmul.mubr.msk.f32.vlgmr.msra.gmra.mrb[0].mxu1 %vm50_vm1, %v164_v31 }
  0x15   :  { %2325 = vmatpush3.bf16.msra.mxu0 %v2851_v32  ;;  %2349 = vmatpush3.bf16.msra.mxu1 %v2784_v8 }
  0x16   :  { %2326 = vmatprep.subr.bf16.mxu0 %v2705_v4  ;;  %2350 = vmatprep.subr.bf16.mxu1 %v2705_v4 }
  0x17   :  { %1914 = vmatprep.mubr.msk.f32.mxu1 %vm2706_vm0, %v2707_v13  ;;  %1895 = vmatprep.mubr.msk.f32.mxu0 %vm2706_vm0, %v2707_v13 }
  0x19   :  { %2328 = vmatpush3.bf16.msra.mxu0 %v2864_v35  ;;  %2352 = vmatpush3.bf16.msra.mxu1 %v2801_v15 }
  0x1a   :  { %2329 = vmatprep.subr.bf16.mxu0 %v2705_v4  ;;  %2353 = vmatprep.subr.bf16.mxu1 %v2705_v4 }
  0x1d   :  { %2331 = vmatpush3.bf16.msra.mxu0 %v2880_v38  ;;  %2355 = vmatpush3.bf16.msra.mxu1 %v2825_v23 }
  0x1e   :  { %2332 = vmatprep.subr.bf16.mxu0 %v2705_v4  ;;  %2356 = vmatprep.subr.bf16.mxu1 %v2705_v4 }
  0x21   :  { %2334 = vmatpush3.bf16.msra.mxu0 %v2892_v41  ;;  %2358 = vmatpush3.bf16.msra.mxu1 %v2835_v27 }
  0x22   :  { %2335 = vmatprep.subr.bf16.mxu0 %v2705_v4  ;;  %2359 = vmatprep.subr.bf16.mxu1 %v2705_v4 }
  0x25   :  { %2337 = vmatpush3.bf16.msra.mxu0 %v2907_v44 }
  0x26   :  { %2338 = vmatprep.subr.bf16.mxu0 %v2705_v4 }
  0x29   :  { %2340 = vmatpush3.bf16.msra.mxu0 %v2917_v47 }
  0x2a   :  { %2341 = vmatprep.subr.bf16.mxu0 %v2705_v4 }
  0x2d   :  { %2343 = vmatpush3.bf16.msra.mxu0 %v2926_v50 }
  0x2e   :  { %2344 = vmatprep.subr.bf16.mxu0 %v2705_v4 }
  0x31   :  { %2346 = vmatpush3.bf16.msra.mxu0 %v2936_v53 }
  0x32   :  { %2383 = vmatprep.subr.bf16.mxu0 %v2705_v4 }
  0x79   :  { %v244_v62 = vpop.permute.xlu0 %243 }
  0xe7   :  { %v1843_v55 = vpop.f32.mrb[0].mxu0  ;;  %v236_v56 = vpop.f32.mrb[0].mxu1 }
  0xe8   :  { %v2944_v57 = vadd.f32 %v1843_v55, %v1580_v54  ;;  %v123_v58 = vpop.f32.mrb[1].mxu0  ;;  %v1862_v59 = vpop.f32.mrb[1].mxu1 }
  0xe9   :  { %v2946_v60 = vadd.f32 %v1580_v54, %v123_v58 }
  0xeb   :  { %v240_v61 = vadd.f32 %v236_v56, %v2946_v60 }
  0xed   :  { %2625 = vtanh.f32 %v240_v61 }
  0xf7   :  { %v2626_v63 = vpop.eup %2625 }
  0xf8   :  { %v246_v0 = vsel %vm50_vm1, %v2626_v63, %v244_v62  ;;  %1915 = vmatmul.mubr.msk.f32.vlgmr.msra.gmra.mrb[2].mxu1 %vm50_vm1, %v2626_v63 }
  0xf9   :  { %1896 = vmatmul.mubr.f32.vlgmr.msra.gmra.mrb[2].mxu0 %v246_v0  ;;  %2361 = vmatpush3.bf16.msra.mxu1 %v2851_v32 }
  0xfa   :  { %2385 = vmatpush3.bf16.msra.mxu0 %v2784_v8  ;;  %1968 = vmatprep.mubr.msk.f32.mxu0 %vm2706_vm0, %v2707_v13 }
  0xfb   :  { %2386 = vmatprep.subr.bf16.mxu0 %v2705_v4  ;;  %2362 = vmatprep.subr.bf16.mxu1 %v2705_v4 }
  0xfc   :  { %1949 = vmatprep.mubr.msk.f32.mxu1 %vm2706_vm0, %v2707_v13 }
  0xfd   :  { %2364 = vmatpush3.bf16.msra.mxu1 %v2864_v35 }
  0xfe   :  { %2388 = vmatpush3.bf16.msra.mxu0 %v2801_v15  ;;  %2365 = vmatprep.subr.bf16.mxu1 %v2705_v4 }
  0xff   :  { %2389 = vmatprep.subr.bf16.mxu0 %v2705_v4 }
 0x101   :  { %2367 = vmatpush3.bf16.msra.mxu1 %v2880_v38 }
 0x102   :  { %2391 = vmatpush3.bf16.msra.mxu0 %v2825_v23  ;;  %2368 = vmatprep.subr.bf16.mxu1 %v2705_v4 }
 0x103   :  { %2392 = vmatprep.subr.bf16.mxu0 %v2705_v4 }
 0x105   :  { %2370 = vmatpush3.bf16.msra.mxu1 %v2892_v41 }
 0x106   :  { %2394 = vmatpush3.bf16.msra.mxu0 %v2835_v27  ;;  %2371 = vmatprep.subr.bf16.mxu1 %v2705_v4 }
 0x107   :  { %2395 = vmatprep.subr.bf16.mxu0 %v2705_v4 }
 0x109   :  { %2373 = vmatpush3.bf16.msra.mxu1 %v2907_v44 }
 0x10a   :  { %2374 = vmatprep.subr.bf16.mxu1 %v2705_v4 }
 0x10d   :  { %2376 = vmatpush3.bf16.msra.mxu1 %v2917_v47 }
 0x10e   :  { %2377 = vmatprep.subr.bf16.mxu1 %v2705_v4 }
 0x111   :  { %2379 = vmatpush3.bf16.msra.mxu1 %v2926_v50 }
 0x112   :  { %2380 = vmatprep.subr.bf16.mxu1 %v2705_v4 }
 0x115   :  { %2382 = vmatpush3.bf16.msra.mxu1 %v2936_v53 }
 0x116   :  { %2419 = vmatprep.subr.bf16.mxu1 %v2705_v4 }
 0x1cb   :  { %v387_v2 = vpop.f32.mrb[2].mxu1 }
 0x1cc   :  { %v392_v3 = vrot.slane %v387_v2, 6  ;;  %v313_v5 = vpop.f32.mrb[2].mxu0  ;;  %v1916_v6 = vpop.f32.mrb[3].mxu1 }
 0x1cd   :  { %v314_v7 = vadd.f32 %v2982_v1, %v313_v5  ;;  %v1897_v9 = vpop.f32.mrb[3].mxu0 }
 0x1ce   :  { %v394_v10 = vadd.f32 %v392_v3, %v2946_v60 }
 0x1cf   :  { %2627 = vtanh.f32 %v314_v7 }
 0x1d0   :  { %2629 = vtanh.f32 %v394_v10 }
 0x1d9   :  { %v2986_v11 = vpop.eup %2627 }
 0x1da   :  { %v2630_v12 = vpop.eup %2629  ;;  %v397_v14 = vrot.slane %v2986_v11, 6 }
 0x1db   :  { %v477_v16 = vrot.slane %v2630_v12, 2 }
 0x1dc   :  { %398 = vrot.lane.b32.xlu0 %v397_v14, %s2708_s20 }
 0x1dd   :  { %1969 = vmatmul.mubr.msk.f32.vlgmr.msra.gmra.mrb[4].mxu0 %vm50_vm1, %v477_v16 }
 0x1de   :  { %2397 = vmatpush3.bf16.msra.mxu0 %v2851_v32  ;;  %2003 = vmatprep.mubr.msk.f32.mxu0 %vm2706_vm0, %v2707_v13 }
 0x1df   :  { %2398 = vmatprep.subr.bf16.mxu0 %v2705_v4 }
 0x1e2   :  { %2400 = vmatpush3.bf16.msra.mxu0 %v2864_v35 }
 0x1e3   :  { %2401 = vmatprep.subr.bf16.mxu0 %v2705_v4 }
 0x1e6   :  { %2403 = vmatpush3.bf16.msra.mxu0 %v2880_v38 }
 0x1e7   :  { %2404 = vmatprep.subr.bf16.mxu0 %v2705_v4 }
 0x1ea   :  { %2406 = vmatpush3.bf16.msra.mxu0 %v2892_v41 }
 0x1eb   :  { %2407 = vmatprep.subr.bf16.mxu0 %v2705_v4 }
 0x1ee   :  { %2409 = vmatpush3.bf16.msra.mxu0 %v2907_v44 }
 0x1ef   :  { %2410 = vmatprep.subr.bf16.mxu0 %v2705_v4 }
 0x1f2   :  { %2412 = vmatpush3.bf16.msra.mxu0 %v2917_v47 }
 0x1f3   :  { %2413 = vmatprep.subr.bf16.mxu0 %v2705_v4 }
 0x1f6   :  { %2415 = vmatpush3.bf16.msra.mxu0 %v2926_v50 }
 0x1f7   :  { %2416 = vmatprep.subr.bf16.mxu0 %v2705_v4 }
 0x1fa   :  { %2418 = vmatpush3.bf16.msra.mxu0 %v2936_v53 }
 0x1fb   :  { %2455 = vmatprep.subr.bf16.mxu0 %v2705_v4 }
 0x24e   :  { %v399_v17 = vpop.permute.xlu0 %398 }
 0x24f   :  { %v401_v18 = vsel %vm50_vm1, %v2630_v12, %v399_v17 }
 0x250   :  { %v403_v19 = vrot.slane %v401_v18, 2 }
 0x252   :  { %1950 = vmatmul.mubr.f32.vlgmr.msra.gmra.mrb[4].mxu1 %v403_v19 }
 0x253   :  { %2421 = vmatpush3.bf16.msra.mxu1 %v2784_v8  ;;  %2022 = vmatprep.mubr.msk.f32.mxu1 %vm2706_vm0, %v2707_v13 }
 0x254   :  { %2422 = vmatprep.subr.bf16.mxu1 %v2705_v4 }
 0x257   :  { %2424 = vmatpush3.bf16.msra.mxu1 %v2801_v15 }
 0x258   :  { %2425 = vmatprep.subr.bf16.mxu1 %v2705_v4 }
 0x25b   :  { %2427 = vmatpush3.bf16.msra.mxu1 %v2825_v23 }
 0x25c   :  { %2428 = vmatprep.subr.bf16.mxu1 %v2705_v4 }
 0x25f   :  { %2430 = vmatpush3.bf16.msra.mxu1 %v2835_v27 }
 0x260   :  { %2431 = vmatprep.subr.bf16.mxu1 %v2705_v4 }
 0x2b0   :  { %v546_v20 = vpop.f32.mrb[4].mxu0 }
 0x2b1   :  { %v551_v21 = vrot.slane %v546_v20, 4  ;;  %v1970_v22 = vpop.f32.mrb[5].mxu0 }
 0x2b3   :  { %v553_v24 = vadd.f32 %v551_v21, %v2946_v60 }
 0x2b5   :  { %2631 = vtanh.f32 %v553_v24 }
 0x2bf   :  { %v2632_v25 = vpop.eup %2631 }
 0x2c0   :  { %v636_v26 = vrot.slane %v2632_v25, 4 }
 0x2c2   :  { %2023 = vmatmul.mubr.msk.f32.vlgmr.msra.gmra.mrb[6].mxu1 %vm50_vm1, %v636_v26 }
 0x2c3   :  { %2433 = vmatpush3.bf16.msra.mxu1 %v2851_v32  ;;  %2057 = vmatprep.mubr.msk.f32.mxu1 %vm2706_vm0, %v2707_v13 }
 0x2c4   :  { %2434 = vmatprep.subr.bf16.mxu1 %v2705_v4 }
 0x2c7   :  { %2436 = vmatpush3.bf16.msra.mxu1 %v2864_v35 }
 0x2c8   :  { %2437 = vmatprep.subr.bf16.mxu1 %v2705_v4 }
 0x2cb   :  { %2439 = vmatpush3.bf16.msra.mxu1 %v2880_v38 }
 0x2cc   :  { %2440 = vmatprep.subr.bf16.mxu1 %v2705_v4 }
 0x2cf   :  { %2442 = vmatpush3.bf16.msra.mxu1 %v2892_v41 }
 0x2d0   :  { %2443 = vmatprep.subr.bf16.mxu1 %v2705_v4 }
 0x2d3   :  { %2445 = vmatpush3.bf16.msra.mxu1 %v2907_v44 }
 0x2d4   :  { %2446 = vmatprep.subr.bf16.mxu1 %v2705_v4 }
 0x2d7   :  { %2448 = vmatpush3.bf16.msra.mxu1 %v2917_v47 }
 0x2d8   :  { %2449 = vmatprep.subr.bf16.mxu1 %v2705_v4 }
 0x2db   :  { %2451 = vmatpush3.bf16.msra.mxu1 %v2926_v50 }
 0x2dc   :  { %2452 = vmatprep.subr.bf16.mxu1 %v2705_v4 }
 0x2df   :  { %2454 = vmatpush3.bf16.msra.mxu1 %v2936_v53 }
 0x2e0   :  { %2491 = vmatprep.subr.bf16.mxu1 %v2705_v4 }
 0x325   :  { %v471_v28 = vpop.f32.mrb[4].mxu1 }
 0x326   :  { %v472_v29 = vadd.f32 %v2982_v1, %v471_v28  ;;  %v1951_v30 = vpop.f32.mrb[5].mxu1 }
 0x328   :  { %2633 = vtanh.f32 %v472_v29 }
 0x332   :  { %v2634_v31 = vpop.eup %2633 }
 0x333   :  { %v556_v33 = vrot.slane %v2634_v31, 4  ;;  %v1422_v52 = vrot.slane %v2634_v31, 6 }
 0x335   :  { %557 = vrot.lane.b32.xlu1 %v556_v33, %s2708_s20  ;;  %v1436_v58 = vsel %vm1435_vm2, %v2986_v11, %v1422_v52 }
 0x395   :  { %v705_v34 = vpop.f32.mrb[6].mxu1 }
 0x396   :  { %v2024_v36 = vpop.f32.mrb[7].mxu1  ;;  %v710_v37 = vrot.slane %v705_v34, 2 }
 0x398   :  { %v712_v40 = vadd.f32 %v710_v37, %v2946_v60 }
 0x39a   :  { %2635 = vtanh.f32 %v712_v40 }
 0x3a4   :  { %v2636_v45 = vpop.eup %2635 }
 0x3a5   :  { %v795_v46 = vrot.slane %v2636_v45, 6 }
 0x3a7   :  { %v558_v39 = vpop.permute.xlu1 %557 }
 0x3a8   :  { %v560_v42 = vsel %vm50_vm1, %v2632_v25, %v558_v39 }
 0x3a9   :  { %v562_v43 = vrot.slane %v560_v42, 4 }
 0x3ab   :  { %2004 = vmatmul.mubr.f32.vlgmr.msra.gmra.mrb[6].mxu0 %v562_v43 }
 0x3ac   :  { %2457 = vmatpush3.bf16.msra.mxu0 %v2784_v8  ;;  %2076 = vmatprep.mubr.msk.f32.mxu0 %vm2706_vm0, %v2707_v13 }
 0x3ad   :  { %2458 = vmatprep.subr.bf16.mxu0 %v2705_v4 }
 0x3b0   :  { %2460 = vmatpush3.bf16.msra.mxu0 %v2801_v15 }
 0x3b1   :  { %2461 = vmatprep.subr.bf16.mxu0 %v2705_v4 }
 0x3b4   :  { %2463 = vmatpush3.bf16.msra.mxu0 %v2825_v23 }
 0x3b5   :  { %2464 = vmatprep.subr.bf16.mxu0 %v2705_v4 }
 0x3b8   :  { %2466 = vmatpush3.bf16.msra.mxu0 %v2835_v27 }
 0x3b9   :  { %2467 = vmatprep.subr.bf16.mxu0 %v2705_v4 }
 0x3bb   :  { %2077 = vmatmul.mubr.msk.f32.vlgmr.msra.gmra.mrb[8].mxu0 %vm50_vm1, %v795_v46 }
 0x3bc   :  { %2469 = vmatpush3.bf16.msra.mxu0 %v2851_v32  ;;  %2111 = vmatprep.mubr.msk.f32.mxu0 %vm2706_vm0, %v2707_v13 }
 0x3bd   :  { %2470 = vmatprep.subr.bf16.mxu0 %v2705_v4 }
 0x3c0   :  { %2472 = vmatpush3.bf16.msra.mxu0 %v2864_v35 }
 0x3c1   :  { %2473 = vmatprep.subr.bf16.mxu0 %v2705_v4 }
 0x3c4   :  { %2475 = vmatpush3.bf16.msra.mxu0 %v2880_v38 }
 0x3c5   :  { %2476 = vmatprep.subr.bf16.mxu0 %v2705_v4 }
 0x3c8   :  { %2478 = vmatpush3.bf16.msra.mxu0 %v2892_v41 }
 0x3c9   :  { %2479 = vmatprep.subr.bf16.mxu0 %v2705_v4 }
 0x3cc   :  { %2481 = vmatpush3.bf16.msra.mxu0 %v2907_v44 }
 0x3cd   :  { %2482 = vmatprep.subr.bf16.mxu0 %v2705_v4 }
 0x3d0   :  { %2484 = vmatpush3.bf16.msra.mxu0 %v2917_v47 }
 0x3d1   :  { %2485 = vmatprep.subr.bf16.mxu0 %v2705_v4 }
 0x3d4   :  { %2487 = vmatpush3.bf16.msra.mxu0 %v2926_v50 }
 0x3d5   :  { %2488 = vmatprep.subr.bf16.mxu0 %v2705_v4 }
 0x3d8   :  { %2490 = vmatpush3.bf16.msra.mxu0 %v2936_v53 }
 0x3d9   :  { %2527 = vmatprep.subr.bf16.mxu0 %v2705_v4 }
 0x47e   :  { %v630_v48 = vpop.f32.mrb[6].mxu0 }
 0x47f   :  { %v631_v49 = vadd.f32 %v2982_v1, %v630_v48  ;;  %v2005_v51 = vpop.f32.mrb[7].mxu0 }
 0x481   :  { %2637 = vtanh.f32 %v631_v49 }
 0x48b   :  { %v2638_v54 = vpop.eup %2637 }
 0x48c   :  { %v715_v55 = vrot.slane %v2638_v54, 2  ;;  %v1424_v56 = vrot.slane %v2638_v54, 4 }
 0x48e   :  { %v864_v59 = vpop.f32.mrb[8].mxu0  ;;  %716 = vrot.lane.b32.xlu1 %v715_v55, %s2708_s20  ;;  %v1438_v60 = vsel %vm1437_vm3, %v1436_v58, %v1424_v56  ;;  %v1444_v56 = vld [vmem:[%s3251_s6] sm:$0xff]  ;;  %v1445_v58 = vld [vmem:[%s3251_s6 + $0x8] sm:$0xff] }
 0x48f   :  { %v2078_v61 = vpop.f32.mrb[9].mxu0  ;;  %v868_v2 = vadd.f32 %v864_v59, %v2944_v57  ;;  %v2599_v59 = vpack.c.bf16 %v1445_v58, %v1444_v56 }
 0x490   :  { %v1447_v61 = vld [vmem:[%s3251_s6 + $0x18] sm:$0xff] }
 0x491   :  { %2639 = vtanh.f32 %v868_v2 }
 0x49b   :  { %v2640_v3 = vpop.eup %2639 }
 0x500   :  { %v717_v62 = vpop.permute.xlu1 %716 }
 0x501   :  { %v719_v63 = vsel %vm50_vm1, %v2636_v45, %v717_v62  ;;  %v1448_v62 = vld [vmem:[%s3251_s6 + $0x20] sm:$0xff] }
 0x502   :  { %v721_v0 = vrot.slane %v719_v63, 6 }
 0x504   :  { %2058 = vmatmul.mubr.f32.vlgmr.msra.gmra.mrb[8].mxu1 %v721_v0  ;;  %v1449_v0 = vld [vmem:[%s3251_s6 + $0x28] sm:$0xff] }
 0x505   :  { %2493 = vmatpush3.bf16.msra.mxu1 %v2784_v8  ;;  %2130 = vmatprep.mubr.msk.f32.mxu1 %vm2706_vm0, %v2707_v13  ;;  %v2607_v2 = vpack.c.bf16 %v1449_v0, %v1448_v62 }
 0x506   :  { %2494 = vmatprep.subr.bf16.mxu1 %v2705_v4 }
 0x509   :  { %2496 = vmatpush3.bf16.msra.mxu1 %v2801_v15 }
 0x50a   :  { %2497 = vmatprep.subr.bf16.mxu1 %v2705_v4 }
 0x50d   :  { %2499 = vmatpush3.bf16.msra.mxu1 %v2825_v23 }
 0x50e   :  { %2500 = vmatprep.subr.bf16.mxu1 %v2705_v4 }
 0x511   :  { %2502 = vmatpush3.bf16.msra.mxu1 %v2835_v27 }
 0x512   :  { %2503 = vmatprep.subr.bf16.mxu1 %v2705_v4 }
 0x514   :  { %2131 = vmatmul.mubr.msk.f32.vlgmr.msra.gmra.mrb[10].mxu1 %vm50_vm1, %v2640_v3 }
 0x515   :  { %2505 = vmatpush3.bf16.msra.mxu1 %v2851_v32  ;;  %2165 = vmatprep.mubr.msk.f32.mxu1 %vm2706_vm0, %v2707_v13 }
 0x516   :  { %2506 = vmatprep.subr.bf16.mxu1 %v2705_v4 }
 0x519   :  { %2508 = vmatpush3.bf16.msra.mxu1 %v2864_v35 }
 0x51a   :  { %2509 = vmatprep.subr.bf16.mxu1 %v2705_v4 }
 0x51d   :  { %2511 = vmatpush3.bf16.msra.mxu1 %v2880_v38 }
 0x51e   :  { %2512 = vmatprep.subr.bf16.mxu1 %v2705_v4 }
 0x521   :  { %2514 = vmatpush3.bf16.msra.mxu1 %v2892_v41 }
 0x522   :  { %2515 = vmatprep.subr.bf16.mxu1 %v2705_v4 }
 0x525   :  { %2517 = vmatpush3.bf16.msra.mxu1 %v2907_v44 }
 0x526   :  { %2518 = vmatprep.subr.bf16.mxu1 %v2705_v4 }
 0x529   :  { %2520 = vmatpush3.bf16.msra.mxu1 %v2917_v47 }
 0x52a   :  { %2521 = vmatprep.subr.bf16.mxu1 %v2705_v4 }
 0x52d   :  { %2523 = vmatpush3.bf16.msra.mxu1 %v2926_v50 }
 0x52e   :  { %2524 = vmatprep.subr.bf16.mxu1 %v2705_v4 }
 0x531   :  { %2526 = vmatpush3.bf16.msra.mxu1 %v2936_v53 }
 0x532   :  { %2563 = vmatprep.subr.bf16.mxu1 %v2705_v4 }
 0x5d7   :  { %v789_v5 = vpop.f32.mrb[8].mxu1 }
 0x5d8   :  { %v790_v6 = vadd.f32 %v2982_v1, %v789_v5  ;;  %v2059_v7 = vpop.f32.mrb[9].mxu1  ;;  %v1451_v5 = vld [vmem:[%s3251_s6 + $0x38] sm:$0xff] }
 0x5da   :  { %2641 = vtanh.f32 %v790_v6 }
 0x5e4   :  { %v2642_v9 = vpop.eup %2641 }
 0x5e5   :  { %871 = vrot.lane.b32.xlu0 %v2642_v9, %s2708_s20  ;;  %v1426_v10 = vrot.slane %v2642_v9, 2 }
 0x5e7   :  { %v1015_v11 = vpop.f32.mrb[10].mxu1  ;;  %v3112_v12 = vsel %vm1439_vm4, %v1438_v60, %v1426_v10  ;;  %v1446_v60 = vld [vmem:[%s3251_s6 + $0x10] sm:$0xff] }
 0x5e8   :  { %v2132_v14 = vpop.f32.mrb[11].mxu1  ;;  %v1020_v16 = vrot.slane %v1015_v11, 6  ;;  %v2603_v63 = vpack.c.bf16 %v1447_v61, %v1446_v60 }
 0x5ea   :  { %v1022_v17 = vadd.f32 %v1020_v16, %v2944_v57 }
 0x5ec   :  { %2643 = vtanh.f32 %v1022_v17 }
 0x5f6   :  { %v2644_v20 = vpop.eup %2643 }
 0x5f7   :  { %v1105_v21 = vrot.slane %v2644_v20, 2 }
 0x657   :  { %v872_v18 = vpop.permute.xlu0 %871 }
 0x658   :  { %v874_v19 = vsel %vm50_vm1, %v2640_v3, %v872_v18  ;;  %v1450_v3 = vld [vmem:[%s3251_s6 + $0x30] sm:$0xff]  ;;  %s2709_s6 = smov [#allocation4]  }
 0x659   :  { %2112 = vmatmul.mubr.f32.vlgmr.msra.gmra.mrb[10].mxu0 %v874_v19  ;;  %v2611_v6 = vpack.c.bf16 %v1451_v5, %v1450_v3  ;;  %s1565_s28 = sshll.u32 %s2709_s6, 4  ;;  %s1566_s28 = int_to_ptr.vmem [resolvable:$true] %s1565_s28 }
 0x65a   :  { %2529 = vmatpush3.bf16.msra.mxu0 %v2784_v8  ;;  %2184 = vmatprep.mubr.msk.f32.mxu0 %vm2706_vm0, %v2707_v13  ;;  %s2657_s29 = scalar_lea.vmem %s1566_s28, 64  ;;  %p2662_p1 = scmp.lt.s32.totalorder %s1566_s28, %s1566_s28 }
 0x65b   :  { %2530 = vmatprep.subr.bf16.mxu0 %v2705_v4  ;;  %p2658_p0 = scmp.ne.s32.totalorder %s1566_s28, %s2657_s29  ;;  %p2663_p2 = scmp.lt.s32.totalorder %s2657_s29, %s2657_s29 }
 0x65d   :  { %p2664_p3 = por %p2663_p2, %p2662_p1 }
 0x65e   :  { %2532 = vmatpush3.bf16.msra.mxu0 %v2801_v15 }
 0x65f   :  { %2533 = vmatprep.subr.bf16.mxu0 %v2705_v4  ;;  %p2665_p4 = pnand %p2664_p3, %p2658_p0 }
 0x662   :  { %2535 = vmatpush3.bf16.msra.mxu0 %v2825_v23 }
 0x663   :  { %2536 = vmatprep.subr.bf16.mxu0 %v2705_v4 }
 0x666   :  { %2538 = vmatpush3.bf16.msra.mxu0 %v2835_v27 }
 0x667   :  { %2539 = vmatprep.subr.bf16.mxu0 %v2705_v4 }
 0x669   :  { %2185 = vmatmul.mubr.msk.f32.vlgmr.msra.gmra.mrb[12].mxu0 %vm50_vm1, %v1105_v21 }
 0x66a   :  { %2541 = vmatpush3.bf16.msra.mxu0 %v2851_v32  ;;  %2219 = vmatprep.mubr.msk.f32.mxu0 %vm2706_vm0, %v2707_v13 }
 0x66b   :  { %2542 = vmatprep.subr.bf16.mxu0 %v2705_v4 }
 0x66e   :  { %2544 = vmatpush3.bf16.msra.mxu0 %v2864_v35 }
 0x66f   :  { %2545 = vmatprep.subr.bf16.mxu0 %v2705_v4 }
 0x672   :  { %2547 = vmatpush3.bf16.msra.mxu0 %v2880_v38 }
 0x673   :  { %2548 = vmatprep.subr.bf16.mxu0 %v2705_v4 }
 0x676   :  { %2550 = vmatpush3.bf16.msra.mxu0 %v2892_v41 }
 0x677   :  { %2551 = vmatprep.subr.bf16.mxu0 %v2705_v4 }
 0x67a   :  { %2553 = vmatpush3.bf16.msra.mxu0 %v2907_v44 }
 0x67b   :  { %2554 = vmatprep.subr.bf16.mxu0 %v2705_v4 }
 0x67e   :  { %2556 = vmatpush3.bf16.msra.mxu0 %v2917_v47 }
 0x67f   :  { %2557 = vmatprep.subr.bf16.mxu0 %v2705_v4 }
 0x682   :  { %2559 = vmatpush3.bf16.msra.mxu0 %v2926_v50 }
 0x683   :  { %2560 = vmatprep.subr.bf16.mxu0 %v2705_v4 }
 0x686   :  { %2562 = vmatpush3.bf16.msra.mxu0 %v2936_v53 }
 0x687   :  { %2600 = vmatprep.subr.bf16.mxu0 %v2599_v59 }
 0x72c   :  { %v941_v22 = vpop.f32.mrb[10].mxu0 }
 0x72d   :  { %v942_v24 = vadd.f32 %v2982_v1, %v941_v22  ;;  %v2113_v25 = vpop.f32.mrb[11].mxu0 }
 0x72f   :  { %2645 = vtanh.f32 %v942_v24 }
 0x739   :  { %v3145_v26 = vpop.eup %2645 }
 0x73a   :  { %v1025_v28 = vrot.slane %v3145_v26, 6 }
 0x73c   :  { %v1174_v29 = vpop.f32.mrb[12].mxu0  ;;  %1026 = vrot.lane.b32.xlu1 %v1025_v28, %s2708_s20 }
 0x73d   :  { %v2186_v30 = vpop.f32.mrb[13].mxu0  ;;  %v1179_v31 = vrot.slane %v1174_v29, 4 }
 0x73f   :  { %v1181_v34 = vadd.f32 %v1179_v31, %v2944_v57 }
 0x741   :  { %2647 = vtanh.f32 %v1181_v34 }
 0x74b   :  { %v2648_v39 = vpop.eup %2647 }
 0x74c   :  { %v1264_v40 = vrot.slane %v2648_v39, 4 }
 0x7ae   :  { %v1027_v33 = vpop.permute.xlu1 %1026 }
 0x7af   :  { %v1029_v36 = vsel %vm50_vm1, %v2644_v20, %v1027_v33 }
 0x7b0   :  { %v1031_v37 = vrot.slane %v1029_v36, 2 }
 0x7b2   :  { %2166 = vmatmul.mubr.f32.vlgmr.msra.gmra.mrb[12].mxu1 %v1031_v37 }
 0x7b3   :  { %2565 = vmatpush3.bf16.msra.mxu1 %v2784_v8  ;;  %2238 = vmatprep.mubr.msk.f32.mxu1 %vm2706_vm0, %v2707_v13 }
 0x7b4   :  { %2566 = vmatprep.subr.bf16.mxu1 %v2705_v4 }
 0x7b7   :  { %2568 = vmatpush3.bf16.msra.mxu1 %v2801_v15 }
 0x7b8   :  { %2569 = vmatprep.subr.bf16.mxu1 %v2705_v4 }
 0x7bb   :  { %2571 = vmatpush3.bf16.msra.mxu1 %v2825_v23 }
 0x7bc   :  { %2572 = vmatprep.subr.bf16.mxu1 %v2705_v4 }
 0x7bf   :  { %2574 = vmatpush3.bf16.msra.mxu1 %v2835_v27 }
 0x7c0   :  { %2575 = vmatprep.subr.bf16.mxu1 %v2705_v4 }
 0x7c2   :  { %2239 = vmatmul.mubr.msk.f32.vlgmr.msra.gmra.mrb[14].mxu1 %vm50_vm1, %v1264_v40 }
 0x7c3   :  { %2577 = vmatpush3.bf16.msra.mxu1 %v2851_v32  ;;  %2273 = vmatprep.mubr.msk.f32.mxu1 %vm2706_vm0, %v2707_v13 }
 0x7c4   :  { %2578 = vmatprep.subr.bf16.mxu1 %v2705_v4 }
 0x7c7   :  { %2580 = vmatpush3.bf16.msra.mxu1 %v2864_v35 }
 0x7c8   :  { %2581 = vmatprep.subr.bf16.mxu1 %v2705_v4 }
 0x7cb   :  { %2583 = vmatpush3.bf16.msra.mxu1 %v2880_v38 }
 0x7cc   :  { %2584 = vmatprep.subr.bf16.mxu1 %v2705_v4 }
 0x7cf   :  { %2586 = vmatpush3.bf16.msra.mxu1 %v2892_v41 }
 0x7d0   :  { %2587 = vmatprep.subr.bf16.mxu1 %v2705_v4 }
 0x7d3   :  { %2589 = vmatpush3.bf16.msra.mxu1 %v2907_v44 }
 0x7d4   :  { %2590 = vmatprep.subr.bf16.mxu1 %v2705_v4 }
 0x7d7   :  { %2592 = vmatpush3.bf16.msra.mxu1 %v2917_v47 }
 0x7d8   :  { %2593 = vmatprep.subr.bf16.mxu1 %v2705_v4 }
 0x7db   :  { %2595 = vmatpush3.bf16.msra.mxu1 %v2926_v50 }
 0x7dc   :  { %2596 = vmatprep.subr.bf16.mxu1 %v2705_v4 }
 0x7df   :  { %2598 = vmatpush3.bf16.msra.mxu1 %v2936_v53 }
 0x885   :  { %v1099_v8 = vpop.f32.mrb[12].mxu1 }
 0x886   :  { %v1100_v13 = vadd.f32 %v2982_v1, %v1099_v8  ;;  %v2167_v15 = vpop.f32.mrb[13].mxu1 }
 0x888   :  { %2649 = vtanh.f32 %v1100_v13 }
 0x892   :  { %v2650_v23 = vpop.eup %2649 }
 0x893   :  { %v1184_v27 = vrot.slane %v2650_v23, 4  ;;  %v1428_v45 = vrot.slane %v2650_v23, 6 }
 0x895   :  { %v1333_v32 = vpop.f32.mrb[14].mxu1  ;;  %1185 = vrot.lane.b32.xlu0 %v1184_v27, %s2708_s20  ;;  %v1441_v49 = vsel %vm1435_vm2, %v3145_v26, %v1428_v45 }
 0x896   :  { %v1338_v35 = vrot.slane %v1333_v32, 2  ;;  %v2240_v38 = vpop.f32.mrb[15].mxu1 }
 0x898   :  { %v1340_v41 = vadd.f32 %v1338_v35, %v2944_v57 }
 0x89a   :  { %2651 = vtanh.f32 %v1340_v41 }
 0x8a4   :  { %v2652_v44 = vpop.eup %2651 }
 0x8a5   :  { %1544 = vst.msk [vmem:[#allocation4 - $0x6] sm:$0xc0] %vm1543_vm5, %v2652_v44 }
 0x907   :  { %v1186_v4 = vpop.permute.xlu0 %1185 }
 0x908   :  { %v1188_v47 = vsel %vm50_vm1, %v2648_v39, %v1186_v4 }
 0x909   :  { %v1190_v50 = vrot.slane %v1188_v47, 4 }
 0x90b   :  { %2220 = vmatmul.mubr.f32.vlgmr.msra.gmra.mrb[14].mxu0 %v1190_v50 }
 0x90c   :  { %2292 = vmatprep.mubr.msk.f32.mxu0 %vm50_vm1, %v3112_v12  ;;  %2602 = vmatpush3.bf16.msra.mxu0 %v2599_v59 }
 0x90d   :  { %2604 = vmatprep.subr.bf16.mxu0 %v2603_v63 }
 0x910   :  { %2606 = vmatpush3.bf16.msra.mxu0 %v2603_v63 }
 0x911   :  { %2608 = vmatprep.subr.bf16.mxu0 %v2607_v2 }
 0x914   :  { %2610 = vmatpush3.bf16.msra.mxu0 %v2607_v2 }
 0x915   :  { %2612 = vmatprep.subr.bf16.mxu0 %v2611_v6 }
 0x918   :  { %2614 = vmatpush3.bf16.msra.mxu0 %v2611_v6 }
 0x9de   :  { %v1258_v53 = vpop.f32.mrb[14].mxu0 }
 0x9df   :  { %v1259_v42 = vadd.f32 %v2982_v1, %v1258_v53  ;;  %v2221_v43 = vpop.f32.mrb[15].mxu0 }
 0x9e1   :  { %2653 = vtanh.f32 %v1259_v42 }
 0x9eb   :  { %v2654_v46 = vpop.eup %2653 }
 0x9ec   :  { %v1430_v57 = vrot.slane %v2654_v46, 4  ;;  %v1343_v48 = vrot.slane %v2654_v46, 2 }
 0x9ee   :  { %1344 = vrot.lane.b32.xlu1 %v1343_v48, %s2708_s20  ;;  %v1442_v51 = vsel %vm1437_vm3, %v1441_v49, %v1430_v57 }
 0xa60   :  { %v1345_v52 = vpop.permute.xlu1 %1344 }
 0xa61   :  { %v1347_v54 = vsel %vm50_vm1, %v2652_v44, %v1345_v52 }
 0xa62   :  { %v1349_v55 = vrot.slane %v1347_v54, 6 }
 0xa64   :  { %2274 = vmatmul.mubr.f32.vlgmr.msra.gmra.mrb[16].mxu1 %v1349_v55 }
 0xb37   :  { %v1417_v7 = vpop.f32.mrb[16].mxu1 }
 0xb38   :  { %v1418_v9 = vadd.f32 %v2982_v1, %v1417_v7  ;;  %v2275_v10 = vpop.f32.mrb[17].mxu1 }
 0xb3a   :  { %2655 = vtanh.f32 %v1418_v9 }
 0xb44   :  { %v2656_v11 = vpop.eup %2655 }
 0xb45   :  { %v1433_v12 = vrot.slane %v2656_v11, 2  ;;  %1547 = vst.msk [vmem:[#allocation4 + $0x2] sm:$0x3] %vm1546_vm6, %v2656_v11 }
 0xb47   :  { %v1443_v14 = vsel %vm1439_vm4, %v1442_v51, %v1433_v12 }
 0xb48   :  { %2293 = vmatmul.mubr.msk.f32.vlgmr.msra.gmra.mrb[16].mxu0 %vm50_vm1, %v1443_v14 }
 0xb49   :  { %2668 = shalt.err (!%p2665_p4)
}
 0xb4a   :  { %s2669_s11 = scalar_lea.hbm %s3254_s9, 64 }
 0xb4b   :  { %p2670_p5 = scmp.ne.s32.totalorder %s3254_s9, %s2669_s11  ;;  %p2673_p6 = scmp.lt.u32.totalorder %s2669_s11, %s3254_s9 }
 0xb4d   :  { %p2675_p7 = pnand %p2673_p6, %p2670_p5 }
 0xb4f   :  { %2678 = shalt.err (!%p2675_p7)
}
 0xb50   :  { %s2710_s4 = smov 32   ;;  %s2711_s14 = smov 2   ;;  %v1594_v1 = vld [vmem:[%s3252_s7] ss:$0 sm:$0xff]  ;;  %vm1540_vm7 = vcmask 80896  }
 0xb51   :  { %1571 = dma.vmem_to_hbm [thread:$0]  %s1566_s28, 64, %s3254_s9, [#allocation5], %s2710_s4, %s2710_s4, %s2711_s14  }
 0xb52   :  { %s2712_s18 = smov [#allocation2]  }
 0xb53   :  { %s1553_s20 = sshll.u32 %s2712_s18, 4  ;;  %s1554_s20 = int_to_ptr.vmem [resolvable:$true] %s1553_s20 }
 0xb54   :  { %s2679_s19 = scalar_lea.vmem %s1554_s20, 256  ;;  %p2684_p9 = scmp.lt.s32.totalorder %s1554_s20, %s1554_s20 }
 0xb55   :  { %p2680_p8 = scmp.ne.s32.totalorder %s1554_s20, %s2679_s19  ;;  %p2685_p10 = scmp.lt.s32.totalorder %s2679_s19, %s2679_s19 }
 0xb57   :  { %p2686_p11 = por %p2685_p10, %p2684_p9 }
 0xb59   :  { %p2687_p12 = pnand %p2686_p11, %p2680_p8 }
 0xc1b   :  { %v2294_v16 = vpop.f32.mrb[16].mxu0 }
 0xc1c   :  { %v1537_v17 = vadd.f32 %v2294_v16, %v1594_v1  ;;  %v1531_v18 = vpop.f32.mrb[17].mxu0 }
 0xc1d   :  { %v1532_v19 = vadd.f32 %v1594_v1, %v1531_v18 }
 0xc1e   :  { %1542 = vst.msk [vmem:[#allocation2 + $0x8] sm:$0xff] %vm1540_vm7, %v1537_v17 }
 0xc1f   :  { %1541 = vst.msk [vmem:[#allocation2] sm:$0xff] %vm1540_vm7, %v1532_v19 }
 0xc20   :  { %2690 = shalt.err (!%p2687_p12)
}
 0xc21   :  { %s2691_s7 = scalar_lea.hbm %s3253_s8, 256 }
 0xc22   :  { %p2692_p13 = scmp.ne.s32.totalorder %s3253_s8, %s2691_s7  ;;  %p2695_p0 = scmp.lt.u32.totalorder %s2691_s7, %s3253_s8 }
 0xc24   :  { %p2697_p1 = pnand %p2695_p0, %p2692_p13 }
 0xc26   :  { %2700 = shalt.err (!%p2697_p1)
}
 0xc27   :  { %s2713_s25 = smov 128   ;;  %s2714_s26 = smov 8  }
 0xc28   :  { %1559 = dma.vmem_to_hbm [thread:$0]  %s1554_s20, 256, %s3253_s8, [#allocation3], %s2713_s25, %s2713_s25, %s2714_s26  }
 0xc29   :  { %2701 = dma.done.wait [#allocation3], 256  }
 0xc2a   :  { %2702 = vsyncadd [#allocation3], 4294967040 }
 0xc2b   :  { %2703 = dma.done.wait [#allocation5], 64  }
 0xc2c   :  { %2704 = vsyncadd [#allocation5], 4294967232 }
 0xc2d   :  { %1578 = vsyncpa [#allocation3], 1 }
 0xc2e   :  { %1579 = vsyncpa [#allocation5], 1 }

</bundles_post_ra>
